<compile_context>
chip_gen: v7x
topology: tpu7x:2x2x1
jax: 0.10.0
libtpu: 0.0.40
codegen_flags: <defaults>
</compile_context>

<pallas_src>
import jax
import jax.numpy as jnp
from jax.experimental import pallas as pl
from jax.experimental.pallas import tpu as pltpu


def _frozen_bn_kernel(x_ref, scale_ref, shift_ref, o_ref):
    # Elementwise affine: y = x * scale + shift, scale/shift broadcast over lanes.
    # Compute in f32 (params are f32) and cast back to the output dtype so
    # bf16 inputs do not lose precision in the affine math.
    x = x_ref[...].astype(jnp.float32)
    o_ref[...] = (x * scale_ref[...] + shift_ref[...]).astype(o_ref.dtype)


def _choose_row_tile(rows, lanes, itemsize, target_bytes=2 * 1024 * 1024):
    """Pick a sublane tile: multiple of 8 (or the full row extent), sized so a
    single input block is ~target_bytes (keeps 2x(in+out) double-buffered
    blocks well under v5e's 16 MiB scoped VMEM and v7x's 64 MiB physical)."""
    if rows <= 8:
        return rows
    tile = min(rows, max(8, target_bytes // max(1, lanes * itemsize)))
    return max(8, (tile // 8) * 8)


def frozen_batch_norm_2d(x, weight, bias, running_mean, running_var, eps=1e-5):
    """x: (N, C, H, W). Returns (N, C, H, W). Matches PyTorch FrozenBatchNorm2d."""
    N, C, H, W = x.shape
    rows = N * C
    lanes = H * W

    # Free reshape of contiguous NCHW memory: (N, C, H, W) -> (N*C, H*W).
    x2d = x.reshape(rows, lanes)

    # O(C) frozen-stat folding in f32 (done once, outside the kernel).
    w32 = weight.astype(jnp.float32)
    b32 = bias.astype(jnp.float32)
    rm32 = running_mean.astype(jnp.float32)
    rv32 = running_var.astype(jnp.float32)
    scale_c = w32 * jax.lax.rsqrt(rv32 + jnp.float32(eps))          # (C,)
    shift_c = b32 - rm32 * scale_c                                  # (C,)

    # Row r of x2d corresponds to channel r % C -> tile across the batch dim.
    scale_col = jnp.tile(scale_c, (N,)).reshape(rows, 1)            # (N*C, 1) f32
    shift_col = jnp.tile(shift_c, (N,)).reshape(rows, 1)            # (N*C, 1) f32

    itemsize = jnp.dtype(x.dtype).itemsize
    row_tile = _choose_row_tile(rows, lanes, itemsize)
    grid = (pl.cdiv(rows, row_tile),)

    x_spec = pl.BlockSpec((row_tile, lanes), lambda i: (i, 0))
    col_spec = pl.BlockSpec((row_tile, 1), lambda i: (i, 0))

    out2d = pl.pallas_call(
        _frozen_bn_kernel,
        out_shape=jax.ShapeDtypeStruct((rows, lanes), x.dtype),
        grid_spec=pltpu.PrefetchScalarGridSpec(
            num_scalar_prefetch=0,
            grid=grid,
            in_specs=[x_spec, col_spec, col_spec],
            out_specs=pl.BlockSpec((row_tile, lanes), lambda i: (i, 0)),
        ),
        compiler_params=pltpu.CompilerParams(
            dimension_semantics=("parallel",),
            # 2x(in + out) blocks at <=2 MiB each plus tiny param columns:
            # 32 MiB covers it with headroom and is safe on v5e/v6e/v7x.
            vmem_limit_bytes=32 * 1024 * 1024,
        ),
    )(x2d, scale_col, shift_col)

    # Free reshape back to NCHW.
    return out2d.reshape(N, C, H, W)


if __name__ == "__main__":
    key = jax.random.PRNGKey(0)
    N, C, H, W = 2, 4, 16, 16
    k_x, k_w, k_b, k_rm, k_rv = jax.random.split(key, 5)

    x = jax.random.normal(k_x, (N, C, H, W), dtype=jnp.float32)
    # Deterministic "frozen" buffers (module __init__ shapes: (C,)).
    weight = jax.random.normal(k_w, (C,), dtype=jnp.float32) * 0.1 + 1.0
    bias = jax.random.normal(k_b, (C,), dtype=jnp.float32) * 0.1
    running_mean = jax.random.normal(k_rm, (C,), dtype=jnp.float32) * 0.1
    running_var = jnp.abs(jax.random.normal(k_rv, (C,), dtype=jnp.float32)) + 1.0
    eps = 1e-5

    out = frozen_batch_norm_2d(x, weight, bias, running_mean, running_var, eps)
    out = jax.block_until_ready(out)

    # Reference in plain JAX (mirrors the PyTorch forward exactly).
    scale = weight.reshape(1, C, 1, 1) * jax.lax.rsqrt(
        running_var.reshape(1, C, 1, 1) + eps)
    shift = bias.reshape(1, C, 1, 1) - running_mean.reshape(1, C, 1, 1) * scale
    ref = x * scale + shift

    assert out.shape == (N, C, H, W)
    assert jnp.allclose(out, ref, atol=1e-5, rtol=1e-5)
    print("KERNEL_OK")
</pallas_src>

<mosaic_0001>
module attributes {stable_mosaic.version = 11 : i64} {
  func.func @_frozen_bn_kernel(%arg0: i32, %arg1: memref<8x256xf32, #tpu.memory_space<vmem>>, %arg2: memref<8x1xf32, #tpu.memory_space<vmem>>, %arg3: memref<8x1xf32, #tpu.memory_space<vmem>>, %arg4: memref<8x256xf32, #tpu.memory_space<vmem>>) attributes {dimension_semantics = [#tpu.dimension_semantics<parallel>], iteration_bounds = array<i64: 1>, scalar_prefetch = 0 : i64, scratch_operands = 0 : i64, tpu.core_type = #tpu.core_type<tc>, window_params = [{transform_indices = @transform_0, window_bounds = array<i64: 8, 256>}, {transform_indices = @transform_1, window_bounds = array<i64: 8, 1>}, {transform_indices = @transform_2, window_bounds = array<i64: 8, 1>}, {transform_indices = @transform_3, window_bounds = array<i64: 8, 256>}]} {
    %c0 = arith.constant 0 : index
    %c0_0 = arith.constant 0 : index
    %0 = vector.load %arg1[%c0, %c0_0] : memref<8x256xf32, #tpu.memory_space<vmem>>, vector<8x256xf32>
    %c0_1 = arith.constant 0 : index
    %c0_2 = arith.constant 0 : index
    %1 = vector.load %arg2[%c0_1, %c0_2] : memref<8x1xf32, #tpu.memory_space<vmem>>, vector<8x1xf32>
    %2 = vector.broadcast %1 : vector<8x1xf32> to vector<8x256xf32>
    %3 = arith.mulf %0, %2 : vector<8x256xf32>
    %c0_3 = arith.constant 0 : index
    %c0_4 = arith.constant 0 : index
    %4 = vector.load %arg3[%c0_3, %c0_4] : memref<8x1xf32, #tpu.memory_space<vmem>>, vector<8x1xf32>
    %5 = vector.broadcast %4 : vector<8x1xf32> to vector<8x256xf32>
    %6 = arith.addf %3, %5 : vector<8x256xf32>
    %c0_5 = arith.constant 0 : index
    %c0_6 = arith.constant 0 : index
    %7 = vector.load %arg4[%c0_5, %c0_6] : memref<8x256xf32, #tpu.memory_space<vmem>>, vector<8x256xf32>
    tpu.vector_store %arg4[%c0_5, %c0_6], %6 {strides = array<i32>} : memref<8x256xf32, #tpu.memory_space<vmem>>, vector<8x256xf32>,
    return
  }
  func.func @transform_0(%arg0: i32) -> (i32, i32) {
    %c0_i32 = arith.constant 0 : i32
    %c0_i32_0 = arith.constant 0 : i32
    return %arg0, %c0_i32 : i32, i32
  }
  func.func @transform_1(%arg0: i32) -> (i32, i32) {
    %c0_i32 = arith.constant 0 : i32
    %c0_i32_0 = arith.constant 0 : i32
    return %arg0, %c0_i32 : i32, i32
  }
  func.func @transform_2(%arg0: i32) -> (i32, i32) {
    %c0_i32 = arith.constant 0 : i32
    %c0_i32_0 = arith.constant 0 : i32
    return %arg0, %c0_i32 : i32, i32
  }
  func.func @transform_3(%arg0: i32) -> (i32, i32) {
    %c0_i32 = arith.constant 0 : i32
    %c0_i32_0 = arith.constant 0 : i32
    return %arg0, %c0_i32 : i32, i32
  }
}

</mosaic_0001>

<bundles_post_ra>
// kernel: tpu_custom_call.1
= control target key start
LH: loop header
LB: loop body
LE: loop exit
PB: predicated region body
PF: predicated region fallthrough
CT: control target
= control target key end

     0   :  { %s122_s0 = inlined_call_operand.vmem [shape: f32[8,256], index: 0, kind: input, shape index: {}]   ;;  %s123_s1 = inlined_call_operand.vmem [shape: f32[8,1], index: 1, kind: input, shape index: {}]   ;;  %s124_s2 = inlined_call_operand.vmem [shape: f32[8,1], index: 2, kind: input, shape index: {}]   ;;  %s125_s3 = inlined_call_operand.hbm [shape: f32[8,256], index: 3, kind: output, shape index: {}]  }
   0x1   :  { %v17_v0 = vld [vmem:[%s123_s1] sm:$0xff] }
   0x2   :  { %8 = vsyncpa [#allocation3], 0  ;;  %v76_v1 = vmov 0   ;;  %v25_v2 = vld [vmem:[%s124_s2] sm:$0xff]  ;;  %v16_v5 = vld [vmem:[%s122_s0 + $0x8] sm:$0xff]  ;;  %s77_s20 = smov [#allocation2]  }
   0x3   :  { %51 = vset.pattern.permute.xlu0 %v76_v1  ;;  %v15_v4 = vld [vmem:[%s122_s0] sm:$0xff]  ;;  %s41_s1 = sshll.u32 %s77_s20, 4  ;;  %s42_s1 = int_to_ptr.vmem [resolvable:$true] %s41_s1 }
   0x4   :  { %20 = vperm.xlu0 %51, %v17_v0   ;;  %s52_s2 = scalar_lea.vmem %s42_s1, 256  ;;  %p57_p1 = scmp.lt.s32.totalorder %s42_s1, %s42_s1 }
   0x5   :  { %p53_p0 = scmp.ne.s32.totalorder %s42_s1, %s52_s2  ;;  %p58_p2 = scmp.lt.s32.totalorder %s52_s2, %s52_s2 }
   0x7   :  { %p59_p3 = por %p58_p2, %p57_p1 }
   0x8   :  { %28 = vperm.xlu0 %51, %v25_v2  }
   0x9   :  { %p60_p4 = pnand %p59_p3, %p53_p0 }
  0x83   :  { %v21_v3 = vpop.permute.xlu0 %20 }
  0x84   :  { %v23_v6 = vmul.f32 %v21_v3, %v15_v4  ;;  %v24_v7 = vmul.f32 %v21_v3, %v16_v5 }
  0x87   :  { %v29_v8 = vpop.permute.xlu0 %28 }
  0x88   :  { %v31_v9 = vadd.f32 %v29_v8, %v23_v6  ;;  %v32_v10 = vadd.f32 %v29_v8, %v24_v7 }
  0x8a   :  { %33 = vst [vmem:[#allocation2] sm:$0xff] %v31_v9  ;;  %34 = vst [vmem:[#allocation2 + $0x8] sm:$0xff] %v32_v10 }
  0x8b   :  { %63 = shalt.err (!%p60_p4)
}
  0x8c   :  { %s64_s0 = scalar_lea.hbm %s125_s3, 256 }
  0x8d   :  { %p65_p5 = scmp.ne.s32.totalorder %s125_s3, %s64_s0  ;;  %p68_p6 = scmp.lt.u32.totalorder %s64_s0, %s125_s3 }
  0x8f   :  { %p70_p7 = pnand %p68_p6, %p65_p5 }
  0x91   :  { %73 = shalt.err (!%p70_p7)
}
  0x92   :  { %44 = dma.vmem_to_hbm [thread:$0]  %s42_s1, 256, %s125_s3, [#allocation3]  }
  0x93   :  { %74 = dma.done.wait [#allocation3], 256  }
  0x94   :  { %75 = vsyncadd [#allocation3], 4294967040 }
  0x95   :  { %48 = vsyncpa [#allocation3], 1 }

</bundles_post_ra>
